<compile_context>
chip_gen: v7x
topology: tpu7x:2x2x1
jax: 0.10.0
libtpu: 0.0.40
codegen_flags: <defaults>
</compile_context>

<pallas_src>
import jax
import jax.numpy as jnp
from jax.experimental import pallas as pl
from jax.experimental.pallas import tpu as pltpu


def value_net_kernel(x_ref, w1t_ref, b1_ref, w2_ref, b2_ref, o_ref):
    # x_ref  : (TILE_B, S)  f32   natural-layout x tile (contiguous DMA)
    # w1t_ref: (H, S)       bf16  first-layer weight, transposed, VMEM-resident
    # b1_ref : (H, 1)       f32
    # w2_ref : (H, 1)       f32   second-layer weight as a column
    # b2_ref : (1, 1)       f32   scalar in SMEM
    # o_ref  : (1, TILE_B)  f32   lane-dense row of values
    xb = x_ref[...].astype(jnp.bfloat16)                     # VPU cast, in-kernel
    # (H, TILE_B) = contract w1t (H,S) with xb (TILE_B,S) over S.  Contraction
    # on the last dim of both operands (q @ k.T pattern); bf16 MXU, f32 acc.
    h = jax.lax.dot_general(
        w1t_ref[...], xb,
        dimension_numbers=(((1,), (1,)), ((), ())),
        preferred_element_type=jnp.float32)
    h = jnp.tanh(h + b1_ref[...])                            # f32 VPU add + EUP tanh
    # Linear(hidden, 1): VPU multiply + sublane reduce -> lane-dense (1, TILE_B).
    v = jnp.sum(h * w2_ref[...], axis=0, keepdims=True)
    o_ref[...] = v + b2_ref[0, 0]


def value_network_forward(x, w1, b1, w2, b2, *, tile_b=8192):
    """x: (B, state_dim) f32; w1: (state_dim, hidden); b1: (hidden,);
    w2: (hidden, 1); b2: (1,).  Returns (B, 1) f32 = tanh(x@w1+b1)@w2+b2."""
    assert tile_b % 128 == 0
    B, state_dim = x.shape
    hidden = w1.shape[1]

    # hidden lives on the sublane axis -> only needs a multiple of 16 (bf16).
    H = pl.cdiv(hidden, 16) * 16

    # Batch tile: multiple of 128 (lanes of the output row).  Keep >= 2 grid
    # steps (feeds both v7x TensorCores) whenever that adds no extra padding.
    b128 = pl.cdiv(B, 128) * 128
    TILE_B = min(tile_b, b128)
    if b128 // TILE_B < 2 and TILE_B % 256 == 0:
        TILE_B //= 2
    # NOTE: a small trailing remainder pays a full tile of DMA + compute; pick
    # tile_b so batch padding stays well under ~10% of B for large batches.
    B_pad = pl.cdiv(B, TILE_B) * TILE_B

    # ---- one-time, tiny, wrapper-side weight packing (numerically inert) ----
    w1t = jnp.zeros((H, state_dim), jnp.float32).at[:hidden, :].set(w1.T)
    w1t = w1t.astype(jnp.bfloat16)
    b1c = jnp.zeros((H, 1), jnp.float32).at[:hidden, 0].set(b1.reshape(-1))
    w2c = jnp.zeros((H, 1), jnp.float32).at[:hidden, 0].set(w2.reshape(-1))
    b2s = jnp.asarray(b2, jnp.float32).reshape(1, 1)

    # Only pad x when the batch is not already a tile multiple.
    if B_pad != B:
        x_in = jnp.zeros((B_pad, state_dim), x.dtype).at[:B, :].set(x)
    else:
        x_in = x

    out = pl.pallas_call(
        value_net_kernel,
        out_shape=jax.ShapeDtypeStruct((1, B_pad), jnp.float32),
        grid=(B_pad // TILE_B,),
        in_specs=[
            # natural-layout x tile; block spans the full last dim -> contiguous DMA
            pl.BlockSpec((TILE_B, state_dim), lambda i: (i, 0)),
            pl.BlockSpec((H, state_dim), lambda i: (0, 0)),   # weights stay resident
            pl.BlockSpec((H, 1), lambda i: (0, 0)),
            pl.BlockSpec((H, 1), lambda i: (0, 0)),
            pl.BlockSpec(memory_space=pltpu.MemorySpace.SMEM),  # b2 scalar
        ],
        out_specs=pl.BlockSpec((1, TILE_B), lambda i: (0, i)),  # lane-dense output row
        compiler_params=pltpu.CompilerParams(
            # Batch tiles are independent -> shard across both TCs on v7x.
            dimension_semantics=("parallel",),
            # ~5-6 MiB/step at TILE_B=8192; 32 MiB gives headroom for larger
            # tiles while staying inside every generation's physical VMEM.
            vmem_limit_bytes=32 * 1024 * 1024,
        ),
    )(x_in, w1t, b1c, w2c, b2s)
    return out[0, :B].reshape(B, 1)


def init_params(key, state_dim, hidden_dim=64):
    k1, k2, k3, k4 = jax.random.split(key, 4)
    bound1 = 1.0 / (state_dim ** 0.5)
    bound2 = 1.0 / (hidden_dim ** 0.5)
    w1 = jax.random.uniform(k1, (state_dim, hidden_dim), jnp.float32, -bound1, bound1)
    b1 = jax.random.uniform(k2, (hidden_dim,), jnp.float32, -bound1, bound1)
    w2 = jax.random.uniform(k3, (hidden_dim, 1), jnp.float32, -bound2, bound2)
    b2 = jax.random.uniform(k4, (1,), jnp.float32, -bound2, bound2)
    return w1, b1, w2, b2


if __name__ == "__main__":
    key = jax.random.PRNGKey(0)
    k_x, k_p = jax.random.split(key)

    batch, state_dim, hidden_dim = 8, 32, 64
    # NOTE: batch=8 is a smoke test only; real RL use should batch many states
    # per call so the batch tile reaches thousands of rows.

    x = jax.random.normal(k_x, (batch, state_dim), dtype=jnp.float32)
    w1, b1, w2, b2 = init_params(k_p, state_dim, hidden_dim)

    out = jax.block_until_ready(value_network_forward(x, w1, b1, w2, b2))
    assert out.shape == (batch, 1)

    # Reference with matched bf16 rounding of the MXU operands (f32 accumulation).
    xb = x.astype(jnp.bfloat16).astype(jnp.float32)
    w1b = w1.astype(jnp.bfloat16).astype(jnp.float32)
    ref = jnp.tanh(xb @ w1b + b1[None, :]) @ w2 + b2[None, :]
    assert jnp.allclose(out, ref, atol=1e-3, rtol=1e-3)

    # Sanity vs. the pure-f32 PyTorch-equivalent forward.
    ref_f32 = jnp.tanh(x @ w1 + b1[None, :]) @ w2 + b2[None, :]
    assert jnp.allclose(out, ref_f32, atol=5e-2, rtol=5e-2)

    print("KERNEL_OK")
</pallas_src>

<mosaic_0001>
module attributes {stable_mosaic.version = 11 : i64} {
  func.func @value_net_kernel(%arg0: i32, %arg1: memref<128x32xf32, #tpu.memory_space<vmem>>, %arg2: memref<64x32xbf16, #tpu.memory_space<vmem>>, %arg3: memref<64x1xf32, #tpu.memory_space<vmem>>, %arg4: memref<64x1xf32, #tpu.memory_space<vmem>>, %arg5: memref<1x1xf32, #tpu.memory_space<smem>>, %arg6: memref<1x128xf32, #tpu.memory_space<vmem>>) attributes {dimension_semantics = [#tpu.dimension_semantics<parallel>], iteration_bounds = array<i64: 1>, scalar_prefetch = 0 : i64, scratch_operands = 0 : i64, tpu.core_type = #tpu.core_type<tc>, window_params = [{transform_indices = @transform_0, window_bounds = array<i64: 128, 32>}, {pipeline_mode = #tpu.pipeline_mode<synchronous>, transform_indices = @transform_1, window_bounds = array<i64: 64, 32>}, {pipeline_mode = #tpu.pipeline_mode<synchronous>, transform_indices = @transform_2, window_bounds = array<i64: 64, 1>}, {pipeline_mode = #tpu.pipeline_mode<synchronous>, transform_indices = @transform_3, window_bounds = array<i64: 64, 1>}, {transform_indices = @transform_4, window_bounds = array<i64: 1, 1>}, {transform_indices = @transform_5, window_bounds = array<i64: 1, 128>}]} {
    %c0 = arith.constant 0 : index
    %c0_0 = arith.constant 0 : index
    %0 = vector.load %arg1[%c0, %c0_0] : memref<128x32xf32, #tpu.memory_space<vmem>>, vector<128x32xf32>
    %1 = arith.truncf %0 : vector<128x32xf32> to vector<128x32xbf16>
    %c0_1 = arith.constant 0 : index
    %c0_2 = arith.constant 0 : index
    %2 = vector.load %arg2[%c0_1, %c0_2] : memref<64x32xbf16, #tpu.memory_space<vmem>>, vector<64x32xbf16>
    %cst = arith.constant dense<0.000000e+00> : vector<64x128xf32>
    %3 = tpu.matmul %2, %1, %cst {dimension_numbers = #tpu.dot_dimension_numbers<[1], [1], [0], [0], [0, 0, 1, 0], [], []>} : vector<64x32xbf16>, vector<128x32xbf16>, vector<64x128xf32> -> vector<64x128xf32>
    %c0_3 = arith.constant 0 : index
    %c0_4 = arith.constant 0 : index
    %4 = vector.load %arg3[%c0_3, %c0_4] : memref<64x1xf32, #tpu.memory_space<vmem>>, vector<64x1xf32>
    %5 = vector.broadcast %4 : vector<64x1xf32> to vector<64x128xf32>
    %6 = arith.addf %3, %5 : vector<64x128xf32>
    %7 = math.tanh %6 : vector<64x128xf32>
    %c0_5 = arith.constant 0 : index
    %c0_6 = arith.constant 0 : index
    %8 = vector.load %arg4[%c0_5, %c0_6] : memref<64x1xf32, #tpu.memory_space<vmem>>, vector<64x1xf32>
    %9 = vector.broadcast %8 : vector<64x1xf32> to vector<64x128xf32>
    %10 = arith.mulf %7, %9 : vector<64x128xf32>
    %cst_7 = arith.constant dense<0.000000e+00> : vector<128xf32>
    %11 = vector.multi_reduction <add>, %10, %cst_7 [0] : vector<64x128xf32> to vector<128xf32>
    %12 = vector.shape_cast %11 : vector<128xf32> to vector<1x128xf32>
    %c0_8 = arith.constant 0 : index
    %c0_9 = arith.constant 0 : index
    %13 = memref.load %arg5[%c0_8, %c0_9] : memref<1x1xf32, #tpu.memory_space<smem>>
    %14 = vector.broadcast %13 : f32 to vector<1x128xf32>
    %15 = arith.addf %12, %14 : vector<1x128xf32>
    %c0_10 = arith.constant 0 : index
    %c0_11 = arith.constant 0 : index
    %16 = vector.load %arg6[%c0_10, %c0_11] : memref<1x128xf32, #tpu.memory_space<vmem>>, vector<1x128xf32>
    tpu.vector_store %arg6[%c0_10, %c0_11], %15 {strides = array<i32>} : memref<1x128xf32, #tpu.memory_space<vmem>>, vector<1x128xf32>,
    return
  }
  func.func @transform_0(%arg0: i32) -> (i32, i32) {
    %c0_i32 = arith.constant 0 : i32
    %c0_i32_0 = arith.constant 0 : i32
    return %arg0, %c0_i32 : i32, i32
  }
  func.func @transform_1(%arg0: i32) -> (i32, i32) {
    %c0_i32 = arith.constant 0 : i32
    %c0_i32_0 = arith.constant 0 : i32
    %c0_i32_1 = arith.constant 0 : i32
    return %c0_i32, %c0_i32_0 : i32, i32
  }
  func.func @transform_2(%arg0: i32) -> (i32, i32) {
    %c0_i32 = arith.constant 0 : i32
    %c0_i32_0 = arith.constant 0 : i32
    %c0_i32_1 = arith.constant 0 : i32
    return %c0_i32, %c0_i32_0 : i32, i32
  }
  func.func @transform_3(%arg0: i32) -> (i32, i32) {
    %c0_i32 = arith.constant 0 : i32
    %c0_i32_0 = arith.constant 0 : i32
    %c0_i32_1 = arith.constant 0 : i32
    return %c0_i32, %c0_i32_0 : i32, i32
  }
  func.func @transform_4(%arg0: i32) -> (i32, i32) {
    %c0_i32 = arith.constant 0 : i32
    %c0_i32_0 = arith.constant 0 : i32
    %c0_i32_1 = arith.constant 0 : i32
    return %c0_i32, %c0_i32_0 : i32, i32
  }
  func.func @transform_5(%arg0: i32) -> (i32, i32) {
    %c0_i32 = arith.constant 0 : i32
    %c0_i32_0 = arith.constant 0 : i32
    return %c0_i32, %arg0 : i32, i32
  }
}

</mosaic_0001>

<bundles_post_ra>
// kernel: tpu_custom_call.1
= control target key start
LH: loop header
LB: loop body
LE: loop exit
PB: predicated region body
PF: predicated region fallthrough
CT: control target
= control target key end

     0   :  { %vm123_vm0 = vcmask 261120   ;;  %v444_v5 = vmov 0   ;;  %s627_s0 = inlined_call_operand.vmem [shape: f32[128,32], index: 0, kind: input, shape index: {}]   ;;  %s628_s1 = inlined_call_operand.vmem [shape: bf16[64,32], index: 1, kind: input, shape index: {}]   ;;  %s629_s2 = inlined_call_operand.vmem [shape: f32[64,1], index: 2, kind: input, shape index: {}]   ;;  %s630_s3 = inlined_call_operand.vmem [shape: f32[64,1], index: 3, kind: input, shape index: {}]   ;;  %s631_s4 = inlined_call_operand.<no memory space> [shape: f32[1,1], index: 4, kind: input, shape index: {}]   ;;  %s632_s5 = inlined_call_operand.hbm [shape: f32[1,128], index: 5, kind: output, shape index: {}]  }
   0x1   :  { %v23_v0 = vld [vmem:[%s627_s0] sm:$0xff]  ;;  %v24_v1 = vld [vmem:[%s627_s0 + $0x8] sm:$0xff]  ;;  %v25_v2 = vld [vmem:[%s627_s0 + $0x10] sm:$0xff]  ;;  %398 = vset.pattern.permute.xlu0 %v444_v5  ;;  %399 = vset.pattern.permute.xlu1 %v444_v5 }
   0x2   :  { %v39_v3 = vpack.c.bf16 %v24_v1, %v23_v0  ;;  %v26_v4 = vld [vmem:[%s627_s0 + $0x18] sm:$0xff]  ;;  %v27_v8 = vld [vmem:[%s627_s0 + $0x20] sm:$0xff]  ;;  %v28_v9 = vld [vmem:[%s627_s0 + $0x28] sm:$0xff] }
   0x3   :  { %v40_v6 = vpack.c.bf16 %v26_v4, %v25_v2  ;;  %v400_v10 = vld [vmem:[%s628_s1] sm:$0xff]   ;;  %v401_v11 = vld [vmem:[%s628_s1 + $0x10] sm:$0xff]   ;;  %v41_v13 = vpack.c.bf16 %v28_v9, %v27_v8  ;;  %v56_v16 = vld [vmem:[%s629_s2 + $0x8] sm:$0xff] }
   0x4   :  { %380 = vmatprep.subr.msk.bf16.mxu0 %vm123_vm0, %v39_v3  ;;  %381 = vmatprep.subr.msk.bf16.mxu1 %vm123_vm0, %v39_v3  ;;  %v137_v7 = vsel %vm123_vm0, %v39_v3, 0  ;;  %v55_v14 = vld [vmem:[%s629_s2] sm:$0xff]  ;;  %v57_v15 = vld [vmem:[%s629_s2 + $0x10] sm:$0xff]  ;;  %v58_v17 = vld [vmem:[%s629_s2 + $0x18] sm:$0xff] }
   0x5   :  { %341 = vmatpush3.bf16.xpose.msra.mxu0 %v137_v7  ;;  %372 = vmatpush3.bf16.xpose.msra.mxu1 %v137_v7  ;;  %v140_v12 = vsel %vm123_vm0, %v40_v6, 0  ;;  %v29_v18 = vld [vmem:[%s627_s0 + $0x30] sm:$0xff]  ;;  %v30_v19 = vld [vmem:[%s627_s0 + $0x38] sm:$0xff] }
   0x6   :  { %382 = vmatprep.subr.msk.bf16.mxu0 %vm123_vm0, %v40_v6  ;;  %383 = vmatprep.subr.msk.bf16.mxu1 %vm123_vm0, %v40_v6 }
   0x7   :  { %356 = vmatprep.mubr.msk.bf16.mxu0 %vm123_vm0, %v400_v10  ;;  %360 = vmatprep.mubr.msk.bf16.mxu1 %vm123_vm0, %v401_v11 }
   0x8   :  { %65 = vperm.xlu0 %398, %v55_v14   ;;  %75 = vperm.xlu1 %399, %v57_v15  }
   0xc   :  { %70 = vperm.xlu0 %398, %v56_v16   ;;  %80 = vperm.xlu1 %399, %v58_v17  }
   0xd   :  { %343 = vmatpush3.bf16.xpose.msra.mxu0 %v140_v12  ;;  %373 = vmatpush3.bf16.xpose.msra.mxu1 %v140_v12 }
   0xe   :  { %384 = vmatprep.subr.msk.bf16.mxu0 %vm123_vm0, %v41_v13  ;;  %385 = vmatprep.subr.msk.bf16.mxu1 %vm123_vm0, %v41_v13 }
   0xf   :  { %11 = vsyncpa [#allocation4], 0  ;;  %v59_v20 = vld [vmem:[%s629_s2 + $0x20] sm:$0xff]  ;;  %v60_v21 = vld [vmem:[%s629_s2 + $0x28] sm:$0xff]  ;;  %v143_v22 = vsel %vm123_vm0, %v41_v13, 0  ;;  %v42_v23 = vpack.c.bf16 %v30_v19, %v29_v18  ;;  %s445_s12 = smov [#allocation3]  }
  0x10   :  { %85 = vperm.xlu0 %398, %v59_v20   ;;  %90 = vperm.xlu1 %399, %v60_v21   ;;  %v61_v24 = vld [vmem:[%s629_s2 + $0x30] sm:$0xff]  ;;  %v62_v25 = vld [vmem:[%s629_s2 + $0x38] sm:$0xff]  ;;  %v31_v26 = vld [vmem:[%s627_s0 + $0x40] sm:$0xff]  ;;  %s312_s13 = sshll.u32 %s445_s12, 4  ;;  %s313_s13 = int_to_ptr.vmem [resolvable:$true] %s312_s13 }
  0x11   :  { %v32_v27 = vld [vmem:[%s627_s0 + $0x48] sm:$0xff]  ;;  %v233_v28 = vld [vmem:[%s630_s3] sm:$0xff]  ;;  %v146_v30 = vsel %vm123_vm0, %v42_v23, 0  ;;  %v235_v32 = vld [vmem:[%s630_s3 + $0x10] sm:$0xff]  ;;  %s420_s14 = scalar_lea.vmem %s313_s13, 16  ;;  %s424_s15 = scalar_lea.vmem %s313_s13, 32 }
  0x12   :  { %v234_v29 = vld [vmem:[%s630_s3 + $0x8] sm:$0xff]  ;;  %v43_v31 = vpack.c.bf16 %v32_v27, %v31_v26  ;;  %v236_v33 = vld [vmem:[%s630_s3 + $0x18] sm:$0xff]  ;;  %v33_v34 = vld [vmem:[%s627_s0 + $0x50] sm:$0xff]  ;;  %p421_p0 = scmp.ne.s32.totalorder %s313_s13, %s420_s14  ;;  %p425_p1 = scmp.lt.s32.totalorder %s313_s13, %s313_s13 }
  0x13   :  { %v34_v35 = vld [vmem:[%s627_s0 + $0x58] sm:$0xff]  ;;  %v237_v36 = vld [vmem:[%s630_s3 + $0x20] sm:$0xff]  ;;  %v238_v37 = vld [vmem:[%s630_s3 + $0x28] sm:$0xff]  ;;  %p426_p2 = scmp.lt.s32.totalorder %s424_s15, %s420_s14 }
  0x14   :  { %95 = vperm.xlu0 %398, %v61_v24   ;;  %100 = vperm.xlu1 %399, %v62_v25   ;;  %v149_v38 = vsel %vm123_vm0, %v43_v31, 0  ;;  %v44_v39 = vpack.c.bf16 %v34_v35, %v33_v34  ;;  %v239_v40 = vld [vmem:[%s630_s3 + $0x30] sm:$0xff]  ;;  %v240_v41 = vld [vmem:[%s630_s3 + $0x38] sm:$0xff]  ;;  %v35_v42 = vld [vmem:[%s627_s0 + $0x60] sm:$0xff] }
  0x15   :  { %345 = vmatpush3.bf16.xpose.msra.mxu0 %v143_v22  ;;  %374 = vmatpush3.bf16.xpose.msra.mxu1 %v143_v22  ;;  %v36_v43 = vld [vmem:[%s627_s0 + $0x68] sm:$0xff]  ;;  %v37_v46 = vld [vmem:[%s627_s0 + $0x70] sm:$0xff]  ;;  %v38_v47 = vld [vmem:[%s627_s0 + $0x78] sm:$0xff]  ;;  %p427_p3 = por %p426_p2, %p425_p1 }
  0x16   :  { %386 = vmatprep.subr.msk.bf16.mxu0 %vm123_vm0, %v42_v23  ;;  %387 = vmatprep.subr.msk.bf16.mxu1 %vm123_vm0, %v42_v23  ;;  %v152_v44 = vsel %vm123_vm0, %v44_v39, 0  ;;  %v45_v45 = vpack.c.bf16 %v36_v43, %v35_v42  ;;  %v46_v49 = vpack.c.bf16 %v38_v47, %v37_v46  ;;  %v402_v51 = vld [vmem:[%s628_s1 + $0x8] sm:$0xff]   ;;  %v403_v52 = vld [vmem:[%s628_s1 + $0x18] sm:$0xff]  }
  0x17   :  { %p428_p4 = pnand %p427_p3, %p421_p0 }
  0x18   :  { %243 = vperm.xlu0 %398, %v233_v28   ;;  %248 = vperm.xlu1 %399, %v234_v29   ;;  %v155_v48 = vsel %vm123_vm0, %v45_v45, 0  ;;  %v158_v50 = vsel %vm123_vm0, %v46_v49, 0 }
  0x1c   :  { %253 = vperm.xlu0 %398, %v235_v32   ;;  %258 = vperm.xlu1 %399, %v236_v33  }
  0x1d   :  { %347 = vmatpush3.bf16.xpose.msra.mxu0 %v146_v30  ;;  %375 = vmatpush3.bf16.xpose.msra.mxu1 %v146_v30 }
  0x1e   :  { %388 = vmatprep.subr.msk.bf16.mxu0 %vm123_vm0, %v43_v31  ;;  %389 = vmatprep.subr.msk.bf16.mxu1 %vm123_vm0, %v43_v31 }
  0x20   :  { %263 = vperm.xlu0 %398, %v237_v36   ;;  %268 = vperm.xlu1 %399, %v238_v37  }
  0x24   :  { %273 = vperm.xlu0 %398, %v239_v40   ;;  %278 = vperm.xlu1 %399, %v240_v41  }
  0x25   :  { %349 = vmatpush3.bf16.xpose.msra.mxu0 %v149_v38  ;;  %376 = vmatpush3.bf16.xpose.msra.mxu1 %v149_v38 }
  0x26   :  { %390 = vmatprep.subr.msk.bf16.mxu0 %vm123_vm0, %v44_v39  ;;  %391 = vmatprep.subr.msk.bf16.mxu1 %vm123_vm0, %v44_v39 }
  0x2d   :  { %351 = vmatpush3.bf16.xpose.msra.mxu0 %v152_v44  ;;  %377 = vmatpush3.bf16.xpose.msra.mxu1 %v152_v44 }
  0x2e   :  { %392 = vmatprep.subr.msk.bf16.mxu0 %vm123_vm0, %v45_v45  ;;  %393 = vmatprep.subr.msk.bf16.mxu1 %vm123_vm0, %v45_v45 }
  0x35   :  { %353 = vmatpush3.bf16.xpose.msra.mxu0 %v155_v48  ;;  %378 = vmatpush3.bf16.xpose.msra.mxu1 %v155_v48 }
  0x36   :  { %394 = vmatprep.subr.msk.bf16.mxu0 %vm123_vm0, %v46_v49  ;;  %395 = vmatprep.subr.msk.bf16.mxu1 %vm123_vm0, %v46_v49  ;;  %v303_v49 = vstv %s631_s4 }
  0x3d   :  { %355 = vmatpush3.bf16.xpose.msra.mxu0 %v158_v50  ;;  %379 = vmatpush3.bf16.xpose.msra.mxu1 %v158_v50 }
  0x44   :  { %357 = vmatmul.mubr.msk.bf16.vlgmr.msra.gmra.mrb[0].mxu0 %vm123_vm0, %v402_v51  ;;  %361 = vmatmul.mubr.msk.bf16.vlgmr.msra.gmra.mrb[0].mxu1 %vm123_vm0, %v403_v52 }
  0x87   :  { %v66_v53 = vpop.permute.xlu0 %65  ;;  %v76_v54 = vpop.permute.xlu1 %75 }
  0x8b   :  { %v71_v55 = vpop.permute.xlu0 %70  ;;  %v81_v56 = vpop.permute.xlu1 %80 }
  0x8f   :  { %v86_v57 = vpop.permute.xlu0 %85  ;;  %v91_v58 = vpop.permute.xlu1 %90 }
  0x93   :  { %v96_v5 = vpop.permute.xlu0 %95  ;;  %v101_v7 = vpop.permute.xlu1 %100 }
  0x97   :  { %v244_v10 = vpop.permute.xlu0 %243  ;;  %v249_v12 = vpop.permute.xlu1 %248 }
  0x9b   :  { %v254_v16 = vpop.permute.xlu0 %253  ;;  %v259_v19 = vpop.permute.xlu1 %258 }
  0x9f   :  { %v264_v26 = vpop.permute.xlu0 %263  ;;  %v269_v30 = vpop.permute.xlu1 %268 }
  0xa3   :  { %v274_v37 = vpop.permute.xlu0 %273  ;;  %v279_v40 = vpop.permute.xlu1 %278 }
 0x117   :  { %v358_v59 = vpop.f32.mrb[0].mxu0  ;;  %v362_v60 = vpop.f32.mrb[0].mxu1 }
 0x118   :  { %v194_v61 = vpop.f32.mrb[1].mxu0  ;;  %v210_v62 = vpop.f32.mrb[1].mxu1  ;;  %v203_v4 = vadd.f32 %v358_v59, %v76_v54  ;;  %v219_v13 = vadd.f32 %v362_v60, %v96_v5 }
 0x119   :  { %v359_v63 = vpop.f32.mrb[2].mxu0  ;;  %v363_v0 = vpop.f32.mrb[2].mxu1  ;;  %v195_v1 = vadd.f32 %v194_v61, %v66_v53  ;;  %v211_v9 = vadd.f32 %v210_v62, %v86_v57 }
 0x11a   :  { %v197_v2 = vpop.f32.mrb[3].mxu0  ;;  %v213_v3 = vpop.f32.mrb[3].mxu1  ;;  %v206_v8 = vadd.f32 %v359_v63, %v81_v56  ;;  %v222_v14 = vadd.f32 %v363_v0, %v101_v7 }
 0x11b   :  { %v198_v6 = vadd.f32 %v197_v2, %v71_v55  ;;  %404 = vtanh.f32 %v195_v1  ;;  %v214_v11 = vadd.f32 %v213_v3, %v91_v58 }
 0x11c   :  { %406 = vtanh.f32 %v203_v4 }
 0x11d   :  { %408 = vtanh.f32 %v198_v6 }
 0x11e   :  { %410 = vtanh.f32 %v206_v8 }
 0x11f   :  { %412 = vtanh.f32 %v211_v9 }
 0x120   :  { %414 = vtanh.f32 %v214_v11 }
 0x121   :  { %416 = vtanh.f32 %v219_v13 }
 0x122   :  { %418 = vtanh.f32 %v222_v14 }
 0x125   :  { %v405_v15 = vpop.eup %404 }
 0x126   :  { %v407_v17 = vpop.eup %406  ;;  %v281_v20 = vmul.f32 %v405_v15, %v244_v10 }
 0x127   :  { %v409_v18 = vpop.eup %408  ;;  %v283_v23 = vmul.f32 %v407_v17, %v254_v16 }
 0x128   :  { %v282_v21 = vmul.f32 %v409_v18, %v249_v12  ;;  %v411_v22 = vpop.eup %410 }
 0x129   :  { %v413_v25 = vpop.eup %412  ;;  %v284_v27 = vmul.f32 %v411_v22, %v259_v19 }
 0x12a   :  { %v289_v24 = vadd.f32 %v282_v21, %v281_v20  ;;  %v415_v29 = vpop.eup %414  ;;  %v285_v31 = vmul.f32 %v413_v25, %v264_v26 }
 0x12b   :  { %v417_v33 = vpop.eup %416  ;;  %v286_v34 = vmul.f32 %v415_v29, %v269_v30 }
 0x12c   :  { %v290_v28 = vadd.f32 %v289_v24, %v283_v23  ;;  %v419_v36 = vpop.eup %418  ;;  %v287_v38 = vmul.f32 %v417_v33, %v274_v37 }
 0x12d   :  { %v288_v41 = vmul.f32 %v419_v36, %v279_v40 }
 0x12e   :  { %v291_v32 = vadd.f32 %v290_v28, %v284_v27 }
 0x130   :  { %v292_v35 = vadd.f32 %v291_v32, %v285_v31 }
 0x132   :  { %v293_v39 = vadd.f32 %v292_v35, %v286_v34 }
 0x134   :  { %v294_v42 = vadd.f32 %v293_v39, %v287_v38 }
 0x136   :  { %v295_v43 = vadd.f32 %v294_v42, %v288_v41 }
 0x138   :  { %v296_v44 = vrot.slane %v295_v43, 4 }
 0x13a   :  { %v297_v45 = vadd.f32 %v296_v44, %v295_v43 }
 0x13c   :  { %v298_v46 = vrot.slane %v297_v45, 2 }
 0x13e   :  { %v299_v47 = vadd.f32 %v298_v46, %v297_v45 }
 0x140   :  { %v300_v48 = vrot.slane %v299_v47, 1 }
 0x142   :  { %v301_v50 = vadd.f32 %v300_v48, %v299_v47 }
 0x144   :  { %v304_v51 = vadd.f32 %v303_v49, %v301_v50 }
 0x146   :  { %305 = vst [vmem:[#allocation3] sm:$0x1] %v304_v51 }
 0x147   :  { %431 = shalt.err (!%p428_p4)
}
 0x148   :  { %s432_s18 = scalar_lea.hbm %s632_s5, 16 }
 0x149   :  { %p433_p5 = scmp.ne.s32.totalorder %s632_s5, %s432_s18  ;;  %p436_p6 = scmp.lt.u32.totalorder %s432_s18, %s632_s5 }
 0x14b   :  { %p438_p7 = pnand %p436_p6, %p433_p5 }
 0x14d   :  { %441 = shalt.err (!%p438_p7)
}
 0x14e   :  { %315 = dma.vmem_to_hbm [thread:$0]  %s313_s13, 16, %s632_s5, [#allocation4]  }
 0x14f   :  { %442 = dma.done.wait [#allocation4], 16  }
 0x150   :  { %443 = vsyncadd [#allocation4], 4294967280 }
 0x151   :  { %319 = vsyncpa [#allocation4], 1 }

</bundles_post_ra>
